<compile_context>
chip_gen: v5e
topology: v5e:2x2
jax: 0.10.0
libtpu: 0.0.40
codegen_flags: <defaults>
</compile_context>

<pallas_src>
import functools

import jax
import jax.numpy as jnp
from jax.experimental import pallas as pl
from jax.experimental.pallas import tpu as pltpu

K_RAW = 40 * 41     # 1640
K_PAD = 13 * 128    # 1664  (zero-padded contraction dim)
H = 128
OUT = 8
OUT_PAD = 128       # lane-dense output width


def _round_up(n, m):
    return ((n + m - 1) // m) * m


def kwsnet_kernel(x_ref,
                  w1_ref, b1_ref,
                  w2_ref, b2_ref,
                  w3_ref, b3_ref,
                  w4_ref, b4_ref,
                  o_ref):
    # x_ref: (TM, K_PAD) bf16 tile of the (padded) batch; weights are bf16, resident.
    # Biases / ReLU / accumulation stay f32 (safe on v5e's no-bf16 VPU).
    h = jnp.dot(x_ref[...], w1_ref[...], preferred_element_type=jnp.float32) + b1_ref[...]
    h = jnp.maximum(h, 0.0)

    h = jnp.dot(h.astype(jnp.bfloat16), w2_ref[...],
                preferred_element_type=jnp.float32) + b2_ref[...]
    h = jnp.maximum(h, 0.0)

    h = jnp.dot(h.astype(jnp.bfloat16), w3_ref[...],
                preferred_element_type=jnp.float32) + b3_ref[...]
    h = jnp.maximum(h, 0.0)

    h = jnp.dot(h.astype(jnp.bfloat16), w4_ref[...],
                preferred_element_type=jnp.float32) + b4_ref[...]

    o_ref[...] = h.astype(o_ref.dtype)   # (TM, 128) lane-dense store


def prepare_params(params):
    """Convert f32 (in,out) params to kernel layout:
    K-padded w1, lane-padded fc4, bf16 weights, f32 biases."""
    (w1, b1, w2, b2, w3, b3, w4, b4) = params
    w1p = jnp.pad(w1, ((0, K_PAD - K_RAW), (0, 0))).astype(jnp.bfloat16)
    w4p = jnp.pad(w4, ((0, 0), (0, OUT_PAD - OUT))).astype(jnp.bfloat16)
    b4p = jnp.pad(b4, ((0, 0), (0, OUT_PAD - OUT))).astype(jnp.float32)
    return (w1p, b1.astype(jnp.float32),
            w2.astype(jnp.bfloat16), b2.astype(jnp.float32),
            w3.astype(jnp.bfloat16), b3.astype(jnp.float32),
            w4p, b4p)


@functools.partial(jax.jit, static_argnames=("tile_m",))
def kwsnet_forward(x, kernel_params, *, tile_m=1024):
    """x: (B, 40, 41) float32 (flattened like the PyTorch .view(B, -1)).
    kernel_params: output of prepare_params()."""
    B = x.shape[0]

    # One fused preprocessing pass: reshape -> bf16 cast -> single pad covering both
    # the K pad (1640 -> 1664) and the batch pad (B -> bp).
    x2d = x.reshape(B, -1).astype(jnp.bfloat16)         # (B, 1640) bf16

    bp8 = _round_up(B, 8)
    if bp8 <= 8:
        tm = bp8                                          # tiny batch: single 8-row tile
    else:
        # Guarantee >= 2 grid steps (both v7x TensorCores get work), cap at tile_m.
        tm = min(tile_m, _round_up((bp8 + 1) // 2, 8))
    bp = _round_up(B, tm)

    x2d = jnp.pad(x2d, ((0, bp - B), (0, K_PAD - K_RAW)))  # (bp, 1664) bf16

    (w1, b1, w2, b2, w3, b3, w4, b4) = kernel_params

    const = lambda shape: pl.BlockSpec(shape, lambda i: (0,) * len(shape))

    out = pl.pallas_call(
        kwsnet_kernel,
        out_shape=jax.ShapeDtypeStruct((bp, OUT_PAD), jnp.float32),
        grid=(bp // tm,),
        in_specs=[
            pl.BlockSpec((tm, K_PAD), lambda i: (i, 0)),   # x streamed per batch tile
            const((K_PAD, H)), const((1, H)),              # fc1 (resident)
            const((H, H)), const((1, H)),                  # fc2
            const((H, H)), const((1, H)),                  # fc3
            const((H, OUT_PAD)), const((1, OUT_PAD)),      # fc4 (lane-padded to 128)
        ],
        out_specs=pl.BlockSpec((tm, OUT_PAD), lambda i: (i, 0)),
        compiler_params=pltpu.CompilerParams(
            dimension_semantics=("parallel",),
            vmem_limit_bytes=32 * 1024 * 1024,
        ),
    )(x2d, w1, b1, w2, b2, w3, b3, w4, b4)

    return out[:B, :OUT]


def init_params(key):
    """Deterministic init matching the nn.Linear shapes.
    Weights stored transposed relative to PyTorch: (in_features, out_features)."""
    ks = jax.random.split(key, 8)

    def linear(kw, kb, fan_in, fan_out):
        # PyTorch default init: U(-1/sqrt(fan_in), 1/sqrt(fan_in))
        bound = 1.0 / jnp.sqrt(jnp.float32(fan_in))
        w = jax.random.uniform(kw, (fan_in, fan_out), jnp.float32, -bound, bound)
        b = jax.random.uniform(kb, (1, fan_out), jnp.float32, -bound, bound)
        return w, b

    w1, b1 = linear(ks[0], ks[1], K_RAW, H)
    w2, b2 = linear(ks[2], ks[3], H, H)
    w3, b3 = linear(ks[4], ks[5], H, H)
    w4, b4 = linear(ks[6], ks[7], H, OUT)
    return (w1, b1, w2, b2, w3, b3, w4, b4)


def kwsnet_reference(x, params):
    """Pure-JAX reference with the same bf16-weight / f32-accumulation recipe."""
    (w1, b1, w2, b2, w3, b3, w4, b4) = params
    h = x.reshape(x.shape[0], -1)

    def lin(h, w, b):
        return jnp.dot(h.astype(jnp.bfloat16), w.astype(jnp.bfloat16),
                       preferred_element_type=jnp.float32) + b

    h = jnp.maximum(lin(h, w1, b1), 0.0)
    h = jnp.maximum(lin(h, w2, b2), 0.0)
    h = jnp.maximum(lin(h, w3, b3), 0.0)
    return lin(h, w4, b4)


if __name__ == "__main__":
    key = jax.random.PRNGKey(0)
    kx, kx2, kp = jax.random.split(key, 3)

    params = init_params(kp)
    kernel_params = prepare_params(params)

    # Small test consistent with fc1 = Linear(40*41, 128): (batch=2, 40, 41).
    x = jax.random.normal(kx, (2, 40, 41), jnp.float32)
    out = jax.block_until_ready(kwsnet_forward(x, kernel_params))
    ref = kwsnet_reference(x, params)
    assert out.shape == (2, 8)
    assert jnp.allclose(out, ref, atol=1e-2, rtol=1e-2), \
        f"max abs diff {jnp.max(jnp.abs(out - ref))}"

    # Slightly larger batch to exercise the multi-step grid / batch-padding path.
    x2 = jax.random.normal(kx2, (24, 40, 41), jnp.float32)
    out2 = jax.block_until_ready(kwsnet_forward(x2, kernel_params))
    ref2 = kwsnet_reference(x2, params)
    assert out2.shape == (24, 8)
    assert jnp.allclose(out2, ref2, atol=1e-2, rtol=1e-2), \
        f"max abs diff {jnp.max(jnp.abs(out2 - ref2))}"

    print("KERNEL_OK")
</pallas_src>

<mosaic_0001>
module attributes {stable_mosaic.version = 11 : i64} {
  func.func @kwsnet_kernel(%arg0: i32, %arg1: memref<8x1664xbf16, #tpu.memory_space<vmem>>, %arg2: memref<1664x128xbf16, #tpu.memory_space<vmem>>, %arg3: memref<1x128xf32, #tpu.memory_space<vmem>>, %arg4: memref<128x128xbf16, #tpu.memory_space<vmem>>, %arg5: memref<1x128xf32, #tpu.memory_space<vmem>>, %arg6: memref<128x128xbf16, #tpu.memory_space<vmem>>, %arg7: memref<1x128xf32, #tpu.memory_space<vmem>>, %arg8: memref<128x128xbf16, #tpu.memory_space<vmem>>, %arg9: memref<1x128xf32, #tpu.memory_space<vmem>>, %arg10: memref<8x128xf32, #tpu.memory_space<vmem>>) attributes {dimension_semantics = [#tpu.dimension_semantics<parallel>], iteration_bounds = array<i64: 1>, scalar_prefetch = 0 : i64, scratch_operands = 0 : i64, tpu.core_type = #tpu.core_type<tc>, window_params = [{transform_indices = @transform_0, window_bounds = array<i64: 8, 1664>}, {pipeline_mode = #tpu.pipeline_mode<synchronous>, transform_indices = @transform_1, window_bounds = array<i64: 1664, 128>}, {pipeline_mode = #tpu.pipeline_mode<synchronous>, transform_indices = @transform_2, window_bounds = array<i64: 1, 128>}, {pipeline_mode = #tpu.pipeline_mode<synchronous>, transform_indices = @transform_3, window_bounds = array<i64: 128, 128>}, {pipeline_mode = #tpu.pipeline_mode<synchronous>, transform_indices = @transform_4, window_bounds = array<i64: 1, 128>}, {pipeline_mode = #tpu.pipeline_mode<synchronous>, transform_indices = @transform_5, window_bounds = array<i64: 128, 128>}, {pipeline_mode = #tpu.pipeline_mode<synchronous>, transform_indices = @transform_6, window_bounds = array<i64: 1, 128>}, {pipeline_mode = #tpu.pipeline_mode<synchronous>, transform_indices = @transform_7, window_bounds = array<i64: 128, 128>}, {pipeline_mode = #tpu.pipeline_mode<synchronous>, transform_indices = @transform_8, window_bounds = array<i64: 1, 128>}, {transform_indices = @transform_9, window_bounds = array<i64: 8, 128>}]} {
    %c0 = arith.constant 0 : index
    %c0_0 = arith.constant 0 : index
    %0 = vector.load %arg1[%c0, %c0_0] : memref<8x1664xbf16, #tpu.memory_space<vmem>>, vector<8x1664xbf16>
    %c0_1 = arith.constant 0 : index
    %c0_2 = arith.constant 0 : index
    %1 = vector.load %arg2[%c0_1, %c0_2] : memref<1664x128xbf16, #tpu.memory_space<vmem>>, vector<1664x128xbf16>
    %cst = arith.constant dense<0.000000e+00> : vector<8x128xf32>
    %2 = tpu.matmul %0, %1, %cst {dimension_numbers = #tpu.dot_dimension_numbers<[1], [0], [0], [1], [0, 0, 1, 1], [], []>} : vector<8x1664xbf16>, vector<1664x128xbf16>, vector<8x128xf32> -> vector<8x128xf32>
    %c0_3 = arith.constant 0 : index
    %c0_4 = arith.constant 0 : index
    %3 = vector.load %arg3[%c0_3, %c0_4] : memref<1x128xf32, #tpu.memory_space<vmem>>, vector<1x128xf32>
    %4 = vector.broadcast %3 : vector<1x128xf32> to vector<8x128xf32>
    %5 = arith.addf %2, %4 : vector<8x128xf32>
    %cst_5 = arith.constant 0.000000e+00 : f32
    %6 = vector.broadcast %cst_5 : f32 to vector<8x128xf32>
    %7 = arith.maximumf %5, %6 : vector<8x128xf32>
    %8 = arith.truncf %7 : vector<8x128xf32> to vector<8x128xbf16>
    %c0_6 = arith.constant 0 : index
    %c0_7 = arith.constant 0 : index
    %9 = vector.load %arg4[%c0_6, %c0_7] : memref<128x128xbf16, #tpu.memory_space<vmem>>, vector<128x128xbf16>
    %cst_8 = arith.constant dense<0.000000e+00> : vector<8x128xf32>
    %10 = tpu.matmul %8, %9, %cst_8 {dimension_numbers = #tpu.dot_dimension_numbers<[1], [0], [0], [1], [0, 0, 1, 1], [], []>} : vector<8x128xbf16>, vector<128x128xbf16>, vector<8x128xf32> -> vector<8x128xf32>
    %c0_9 = arith.constant 0 : index
    %c0_10 = arith.constant 0 : index
    %11 = vector.load %arg5[%c0_9, %c0_10] : memref<1x128xf32, #tpu.memory_space<vmem>>, vector<1x128xf32>
    %12 = vector.broadcast %11 : vector<1x128xf32> to vector<8x128xf32>
    %13 = arith.addf %10, %12 : vector<8x128xf32>
    %cst_11 = arith.constant 0.000000e+00 : f32
    %14 = vector.broadcast %cst_11 : f32 to vector<8x128xf32>
    %15 = arith.maximumf %13, %14 : vector<8x128xf32>
    %16 = arith.truncf %15 : vector<8x128xf32> to vector<8x128xbf16>
    %c0_12 = arith.constant 0 : index
    %c0_13 = arith.constant 0 : index
    %17 = vector.load %arg6[%c0_12, %c0_13] : memref<128x128xbf16, #tpu.memory_space<vmem>>, vector<128x128xbf16>
    %cst_14 = arith.constant dense<0.000000e+00> : vector<8x128xf32>
    %18 = tpu.matmul %16, %17, %cst_14 {dimension_numbers = #tpu.dot_dimension_numbers<[1], [0], [0], [1], [0, 0, 1, 1], [], []>} : vector<8x128xbf16>, vector<128x128xbf16>, vector<8x128xf32> -> vector<8x128xf32>
    %c0_15 = arith.constant 0 : index
    %c0_16 = arith.constant 0 : index
    %19 = vector.load %arg7[%c0_15, %c0_16] : memref<1x128xf32, #tpu.memory_space<vmem>>, vector<1x128xf32>
    %20 = vector.broadcast %19 : vector<1x128xf32> to vector<8x128xf32>
    %21 = arith.addf %18, %20 : vector<8x128xf32>
    %cst_17 = arith.constant 0.000000e+00 : f32
    %22 = vector.broadcast %cst_17 : f32 to vector<8x128xf32>
    %23 = arith.maximumf %21, %22 : vector<8x128xf32>
    %24 = arith.truncf %23 : vector<8x128xf32> to vector<8x128xbf16>
    %c0_18 = arith.constant 0 : index
    %c0_19 = arith.constant 0 : index
    %25 = vector.load %arg8[%c0_18, %c0_19] : memref<128x128xbf16, #tpu.memory_space<vmem>>, vector<128x128xbf16>
    %cst_20 = arith.constant dense<0.000000e+00> : vector<8x128xf32>
    %26 = tpu.matmul %24, %25, %cst_20 {dimension_numbers = #tpu.dot_dimension_numbers<[1], [0], [0], [1], [0, 0, 1, 1], [], []>} : vector<8x128xbf16>, vector<128x128xbf16>, vector<8x128xf32> -> vector<8x128xf32>
    %c0_21 = arith.constant 0 : index
    %c0_22 = arith.constant 0 : index
    %27 = vector.load %arg9[%c0_21, %c0_22] : memref<1x128xf32, #tpu.memory_space<vmem>>, vector<1x128xf32>
    %28 = vector.broadcast %27 : vector<1x128xf32> to vector<8x128xf32>
    %29 = arith.addf %26, %28 : vector<8x128xf32>
    %c0_23 = arith.constant 0 : index
    %c0_24 = arith.constant 0 : index
    %30 = vector.load %arg10[%c0_23, %c0_24] : memref<8x128xf32, #tpu.memory_space<vmem>>, vector<8x128xf32>
    tpu.vector_store %arg10[%c0_23, %c0_24], %29 {strides = array<i32>} : memref<8x128xf32, #tpu.memory_space<vmem>>, vector<8x128xf32>,
    return
  }
  func.func @transform_0(%arg0: i32) -> (i32, i32) {
    %c0_i32 = arith.constant 0 : i32
    %c0_i32_0 = arith.constant 0 : i32
    return %arg0, %c0_i32 : i32, i32
  }
  func.func @transform_1(%arg0: i32) -> (i32, i32) {
    %c0_i32 = arith.constant 0 : i32
    %c0_i32_0 = arith.constant 0 : i32
    %c0_i32_1 = arith.constant 0 : i32
    return %c0_i32, %c0_i32_0 : i32, i32
  }
  func.func @transform_2(%arg0: i32) -> (i32, i32) {
    %c0_i32 = arith.constant 0 : i32
    %c0_i32_0 = arith.constant 0 : i32
    %c0_i32_1 = arith.constant 0 : i32
    return %c0_i32, %c0_i32_0 : i32, i32
  }
  func.func @transform_3(%arg0: i32) -> (i32, i32) {
    %c0_i32 = arith.constant 0 : i32
    %c0_i32_0 = arith.constant 0 : i32
    %c0_i32_1 = arith.constant 0 : i32
    return %c0_i32, %c0_i32_0 : i32, i32
  }
  func.func @transform_4(%arg0: i32) -> (i32, i32) {
    %c0_i32 = arith.constant 0 : i32
    %c0_i32_0 = arith.constant 0 : i32
    %c0_i32_1 = arith.constant 0 : i32
    return %c0_i32, %c0_i32_0 : i32, i32
  }
  func.func @transform_5(%arg0: i32) -> (i32, i32) {
    %c0_i32 = arith.constant 0 : i32
    %c0_i32_0 = arith.constant 0 : i32
    %c0_i32_1 = arith.constant 0 : i32
    return %c0_i32, %c0_i32_0 : i32, i32
  }
  func.func @transform_6(%arg0: i32) -> (i32, i32) {
    %c0_i32 = arith.constant 0 : i32
    %c0_i32_0 = arith.constant 0 : i32
    %c0_i32_1 = arith.constant 0 : i32
    return %c0_i32, %c0_i32_0 : i32, i32
  }
  func.func @transform_7(%arg0: i32) -> (i32, i32) {
    %c0_i32 = arith.constant 0 : i32
    %c0_i32_0 = arith.constant 0 : i32
    %c0_i32_1 = arith.constant 0 : i32
    return %c0_i32, %c0_i32_0 : i32, i32
  }
  func.func @transform_8(%arg0: i32) -> (i32, i32) {
    %c0_i32 = arith.constant 0 : i32
    %c0_i32_0 = arith.constant 0 : i32
    %c0_i32_1 = arith.constant 0 : i32
    return %c0_i32, %c0_i32_0 : i32, i32
  }
  func.func @transform_9(%arg0: i32) -> (i32, i32) {
    %c0_i32 = arith.constant 0 : i32
    %c0_i32_0 = arith.constant 0 : i32
    return %arg0, %c0_i32 : i32, i32
  }
}

</mosaic_0001>

<bundles_post_ra>
// kernel: kwsnet_forward.1
= control target key start
LH: loop header
LB: loop body
LE: loop exit
PB: predicated region body
PF: predicated region fallthrough
CT: control target
= control target key end

     0   :  { %14 = vsyncpa [#allocation3], 0  ;;  %s2034_s12 = smov [#allocation2]   ;;  %s2035_s14 = smov 64   ;;  %s2198_s0 = inlined_call_operand.vmem [shape: bf16[8,1664], index: 0, kind: input, shape index: {}]   ;;  %s2199_s1 = inlined_call_operand.hbm [shape: bf16[1664,128], index: 1, kind: input, shape index: {}]   ;;  %s2200_s2 = inlined_call_operand.vmem [shape: f32[1,128], index: 2, kind: input, shape index: {}]   ;;  %s2201_s3 = inlined_call_operand.vmem [shape: bf16[128,128], index: 3, kind: input, shape index: {}]   ;;  %s2202_s4 = inlined_call_operand.vmem [shape: f32[1,128], index: 4, kind: input, shape index: {}]   ;;  %s2203_s5 = inlined_call_operand.vmem [shape: bf16[128,128], index: 5, kind: input, shape index: {}]   ;;  %s2204_s6 = inlined_call_operand.vmem [shape: f32[1,128], index: 6, kind: input, shape index: {}]   ;;  %s2205_s7 = inlined_call_operand.vmem [shape: bf16[128,128], index: 7, kind: input, shape index: {}]   ;;  %s2206_s8 = inlined_call_operand.vmem [shape: f32[1,128], index: 8, kind: input, shape index: {}]   ;;  %s2207_s9 = inlined_call_operand.vmem [shape: f32[8,128], index: 9, kind: output, shape index: {}]  }
   0x1   :  { %s21_s11 = sshll.u32 %s2199_s1, 4  ;;  %s23_s13 = sshll.u32 %s2034_s12, 4  ;;  %s22_s11 = int_to_ptr.hbm [resolvable:$true] %s21_s11  ;;  %s24_s13 = int_to_ptr.vmem [resolvable:$true] %s23_s13 }
   0x2   :  { %s2036_s15 = smov 4  }
   0x3   :  { %29 = dma.hbm_to_vmem [thread:$0]  %s22_s11, 13312, %s24_s13, [#allocation3], %s2035_s14, %s2035_s14, %s2036_s15  }
   0x4   :  { %2032 = dma.done.wait [#allocation3], 13312  }
   0x5   :  { %2033 = vsyncadd [#allocation3], 4294953984  ;;  %v1880_v0 = vld [vmem:[#allocation2 + $0x38] sm:$0xff]  ;;  %v1879_v4 = vld [vmem:[#allocation2 + $0x30] sm:$0xff] }
   0x6   :  { %v1896_v1 = vld [vmem:[#allocation2 + $0xb8] sm:$0xff]  ;;  %937 = vmatpush.bf16.msra.mxu0 %v1880_v0  ;;  %v1895_v5 = vld [vmem:[#allocation2 + $0xb0] sm:$0xff]  ;;  %v1878_v8 = vld [vmem:[#allocation2 + $0x28] sm:$0xff] }
   0x7   :  { %v1888_v2 = vld [vmem:[#allocation2 + $0x78] sm:$0xff]  ;;  %963 = vmatpush.bf16.msra.mxu2 %v1896_v1  ;;  %v1887_v6 = vld [vmem:[#allocation2 + $0x70] sm:$0xff]  ;;  %v1894_v9 = vld [vmem:[#allocation2 + $0xa8] sm:$0xff] }
   0x8   :  { %v1904_v3 = vld [vmem:[#allocation2 + $0xf8] sm:$0xff]  ;;  %950 = vmatpush.bf16.msra.mxu1 %v1888_v2  ;;  %v1903_v7 = vld [vmem:[#allocation2 + $0xf0] sm:$0xff]  ;;  %v1886_v10 = vld [vmem:[#allocation2 + $0x68] sm:$0xff] }
   0x9   :  { %976 = vmatpush.bf16.msra.mxu3 %v1904_v3  ;;  %v1902_v11 = vld [vmem:[#allocation2 + $0xe8] sm:$0xff]  ;;  %v1877_v12 = vld [vmem:[#allocation2 + $0x20] sm:$0xff]  ;;  %v1876_v16 = vld [vmem:[#allocation2 + $0x18] sm:$0xff] }
   0xa   :  { %938 = vmatpush.bf16.msra.mxu0 %v1879_v4  ;;  %v1893_v13 = vld [vmem:[#allocation2 + $0xa0] sm:$0xff]  ;;  %v1892_v17 = vld [vmem:[#allocation2 + $0x98] sm:$0xff]  ;;  %v1875_v20 = vld [vmem:[#allocation2 + $0x10] sm:$0xff] }
   0xb   :  { %964 = vmatpush.bf16.msra.mxu2 %v1895_v5  ;;  %v1885_v14 = vld [vmem:[#allocation2 + $0x60] sm:$0xff]  ;;  %v1884_v18 = vld [vmem:[#allocation2 + $0x58] sm:$0xff]  ;;  %v1891_v21 = vld [vmem:[#allocation2 + $0x90] sm:$0xff] }
   0xc   :  { %951 = vmatpush.bf16.msra.mxu1 %v1887_v6  ;;  %v1901_v15 = vld [vmem:[#allocation2 + $0xe0] sm:$0xff]  ;;  %v1900_v19 = vld [vmem:[#allocation2 + $0xd8] sm:$0xff]  ;;  %v1883_v22 = vld [vmem:[#allocation2 + $0x50] sm:$0xff] }
   0xd   :  { %977 = vmatpush.bf16.msra.mxu3 %v1903_v7  ;;  %v1899_v23 = vld [vmem:[#allocation2 + $0xd0] sm:$0xff]  ;;  %v1874_v24 = vld [vmem:[#allocation2 + $0x8] sm:$0xff]  ;;  %v48_v29 = vld [vmem:[%s2198_s0] sm:$0xff] }
   0xe   :  { %939 = vmatpush.bf16.msra.mxu0 %v1878_v8  ;;  %v1890_v25 = vld [vmem:[#allocation2 + $0x88] sm:$0xff]  ;;  %v1873_v30 = vld [vmem:[#allocation2] sm:$0xff]  ;;  %v274_v33 = vunpack.c.l.b16 %v48_v29  ;;  %v1912_v34 = vld [vmem:[#allocation2 + $0x138] sm:$0xff]  ;;  %v275_v39 = vunpack.c.h.b16 %v48_v29 }
   0xf   :  { %965 = vmatpush.bf16.msra.mxu2 %v1894_v9  ;;  %v1882_v26 = vld [vmem:[#allocation2 + $0x48] sm:$0xff]  ;;  %v1889_v31 = vld [vmem:[#allocation2 + $0x80] sm:$0xff]  ;;  %v1928_v35 = vld [vmem:[#allocation2 + $0x1b8] sm:$0xff] }
  0x10   :  { %952 = vmatpush.bf16.msra.mxu1 %v1886_v10  ;;  %v1898_v27 = vld [vmem:[#allocation2 + $0xc8] sm:$0xff]  ;;  %v1881_v36 = vld [vmem:[#allocation2 + $0x40] sm:$0xff]  ;;  %v1920_v40 = vld [vmem:[#allocation2 + $0x178] sm:$0xff]  ;;  %v287_v43 = vpack.c.b16 %v274_v33, %v274_v33  ;;  %v288_v47 = vpack.c.b16 %v275_v39, %v275_v39 }
  0x11   :  { %978 = vmatpush.bf16.msra.mxu3 %v1902_v11  ;;  %v49_v28 = vld [vmem:[%s2198_s0 + $0x8] sm:$0xff]  ;;  %v1897_v37 = vld [vmem:[#allocation2 + $0xc0] sm:$0xff]  ;;  %v1936_v41 = vld [vmem:[#allocation2 + $0x1f8] sm:$0xff] }
  0x12   :  { %940 = vmatpush.bf16.msra.mxu0 %v1877_v12  ;;  %v276_v32 = vunpack.c.l.b16 %v49_v28  ;;  %v277_v38 = vunpack.c.h.b16 %v49_v28  ;;  %v1911_v44 = vld [vmem:[#allocation2 + $0x130] sm:$0xff]  ;;  %v1910_v50 = vld [vmem:[#allocation2 + $0x128] sm:$0xff]  ;;  %v1909_v54 = vld [vmem:[#allocation2 + $0x120] sm:$0xff] }
  0x13   :  { %966 = vmatpush.bf16.msra.mxu2 %v1893_v13  ;;  %v1927_v45 = vld [vmem:[#allocation2 + $0x1b0] sm:$0xff]  ;;  %v1926_v51 = vld [vmem:[#allocation2 + $0x1a8] sm:$0xff]  ;;  %v1925_v55 = vld [vmem:[#allocation2 + $0x1a0] sm:$0xff] }
  0x14   :  { %953 = vmatpush.bf16.msra.mxu1 %v1885_v14  ;;  %v289_v42 = vpack.c.b16 %v276_v32, %v276_v32  ;;  %v290_v46 = vpack.c.b16 %v277_v38, %v277_v38  ;;  %v1919_v48 = vld [vmem:[#allocation2 + $0x170] sm:$0xff]  ;;  %v1918_v52 = vld [vmem:[#allocation2 + $0x168] sm:$0xff]  ;;  %v1917_v56 = vld [vmem:[#allocation2 + $0x160] sm:$0xff] }
  0x15   :  { %979 = vmatpush.bf16.msra.mxu3 %v1901_v15  ;;  %v1935_v49 = vld [vmem:[#allocation2 + $0x1f0] sm:$0xff]  ;;  %v1934_v53 = vld [vmem:[#allocation2 + $0x1e8] sm:$0xff]  ;;  %v1933_v57 = vld [vmem:[#allocation2 + $0x1e0] sm:$0xff] }
  0x16   :  { %941 = vmatpush.bf16.msra.mxu0 %v1876_v16  ;;  %v1908_v58 = vld [vmem:[#allocation2 + $0x118] sm:$0xff]  ;;  %v1907_v62 = vld [vmem:[#allocation2 + $0x110] sm:$0xff]  ;;  %v1906_v2 = vld [vmem:[#allocation2 + $0x108] sm:$0xff] }
  0x17   :  { %967 = vmatpush.bf16.msra.mxu2 %v1892_v17  ;;  %v1924_v59 = vld [vmem:[#allocation2 + $0x198] sm:$0xff]  ;;  %v1923_v63 = vld [vmem:[#allocation2 + $0x190] sm:$0xff]  ;;  %v1922_v3 = vld [vmem:[#allocation2 + $0x188] sm:$0xff] }
  0x18   :  { %954 = vmatpush.bf16.msra.mxu1 %v1884_v18  ;;  %v1916_v60 = vld [vmem:[#allocation2 + $0x158] sm:$0xff]  ;;  %v1915_v0 = vld [vmem:[#allocation2 + $0x150] sm:$0xff]  ;;  %v1914_v6 = vld [vmem:[#allocation2 + $0x148] sm:$0xff] }
  0x19   :  { %980 = vmatpush.bf16.msra.mxu3 %v1900_v19  ;;  %v1932_v61 = vld [vmem:[#allocation2 + $0x1d8] sm:$0xff]  ;;  %v1931_v1 = vld [vmem:[#allocation2 + $0x1d0] sm:$0xff]  ;;  %v1930_v7 = vld [vmem:[#allocation2 + $0x1c8] sm:$0xff] }
  0x1a   :  { %942 = vmatpush.bf16.msra.mxu0 %v1875_v20  ;;  %v51_v4 = vld [vmem:[%s2198_s0 + $0x18] sm:$0xff]  ;;  %v50_v5 = vld [vmem:[%s2198_s0 + $0x10] sm:$0xff]  ;;  %v1905_v8 = vld [vmem:[#allocation2 + $0x100] sm:$0xff] }
  0x1b   :  { %968 = vmatpush.bf16.msra.mxu2 %v1891_v21  ;;  %v1921_v9 = vld [vmem:[#allocation2 + $0x180] sm:$0xff]  ;;  %v280_v10 = vunpack.c.l.b16 %v51_v4  ;;  %v278_v11 = vunpack.c.l.b16 %v50_v5  ;;  %v1944_v12 = vld [vmem:[#allocation2 + $0x238] sm:$0xff]  ;;  %v281_v16 = vunpack.c.h.b16 %v51_v4  ;;  %v279_v17 = vunpack.c.h.b16 %v50_v5  ;;  %v1942_v28 = vld [vmem:[#allocation2 + $0x228] sm:$0xff] }
  0x1c   :  { %955 = vmatpush.bf16.msra.mxu1 %v1883_v22  ;;  %v1960_v13 = vld [vmem:[#allocation2 + $0x2b8] sm:$0xff]  ;;  %v1913_v14 = vld [vmem:[#allocation2 + $0x140] sm:$0xff]  ;;  %v1943_v22 = vld [vmem:[#allocation2 + $0x230] sm:$0xff] }
  0x1d   :  { %981 = vmatpush.bf16.msra.mxu3 %v1899_v23  ;;  %v1929_v15 = vld [vmem:[#allocation2 + $0x1c0] sm:$0xff]  ;;  %v1952_v18 = vld [vmem:[#allocation2 + $0x278] sm:$0xff]  ;;  %v293_v20 = vpack.c.b16 %v280_v10, %v280_v10  ;;  %v291_v21 = vpack.c.b16 %v278_v11, %v278_v11  ;;  %v1959_v23 = vld [vmem:[#allocation2 + $0x2b0] sm:$0xff] }
  0x1e   :  { %943 = vmatpush.bf16.msra.mxu0 %v1874_v24  ;;  %v1968_v19 = vld [vmem:[#allocation2 + $0x2f8] sm:$0xff]  ;;  %v294_v24 = vpack.c.b16 %v281_v16, %v281_v16  ;;  %v1958_v29 = vld [vmem:[#allocation2 + $0x2a8] sm:$0xff]  ;;  %v1941_v32 = vld [vmem:[#allocation2 + $0x220] sm:$0xff] }
  0x1f   :  { %969 = vmatpush.bf16.msra.mxu2 %v1890_v25  ;;  %v292_v25 = vpack.c.b16 %v279_v17, %v279_v17  ;;  %v1957_v33 = vld [vmem:[#allocation2 + $0x2a0] sm:$0xff]  ;;  %v1948_v38 = vld [vmem:[#allocation2 + $0x258] sm:$0xff]  ;;  %v1970_v4 = vld [vmem:[#allocation2 + $0x308] sm:$0xff] }
  0x20   :  { %956 = vmatpush.bf16.msra.mxu1 %v1882_v26  ;;  %v1951_v26 = vld [vmem:[#allocation2 + $0x270] sm:$0xff]  ;;  %v1964_v39 = vld [vmem:[#allocation2 + $0x2d8] sm:$0xff] }
  0x21   :  { %982 = vmatpush.bf16.msra.mxu3 %v1898_v27  ;;  %v1967_v27 = vld [vmem:[#allocation2 + $0x2f0] sm:$0xff]  ;;  %v1984_v17 = vld [vmem:[%s2201_s3 + $0x38] sm:$0xff] }
  0x22   :  { %944 = vmatpush.bf16.msra.mxu0 %v1873_v30  ;;  %v1950_v30 = vld [vmem:[#allocation2 + $0x268] sm:$0xff]  ;;  %v54_v5 = vld [vmem:[%s2198_s0 + $0x30] sm:$0xf] }
  0x23   :  { %970 = vmatpush.bf16.msra.mxu2 %v1889_v31  ;;  %v1966_v31 = vld [vmem:[#allocation2 + $0x2e8] sm:$0xff] }
  0x24   :  { %957 = vmatpush.bf16.msra.mxu1 %v1881_v36  ;;  %v1940_v36 = vld [vmem:[#allocation2 + $0x218] sm:$0xff] }
  0x25   :  { %983 = vmatpush.bf16.msra.mxu3 %v1897_v37  ;;  %945 = vmatmul.bf16.vlgmr.msra.gmra.mxu0 %v287_v43  ;;  %v1956_v37 = vld [vmem:[#allocation2 + $0x298] sm:$0xff]  ;;  %v1963_v43 = vld [vmem:[#allocation2 + $0x2d0] sm:$0xff] }
  0x26   :  { %989 = vmatpush.bf16.msrb.mxu0 %v1912_v34  ;;  %971 = vmatmul.bf16.vlgmr.msra.gmra.mxu2 %v289_v42  ;;  %v1949_v34 = vld [vmem:[#allocation2 + $0x260] sm:$0xff]  ;;  %v1947_v42 = vld [vmem:[#allocation2 + $0x250] sm:$0xff] }
  0x27   :  { %1015 = vmatpush.bf16.msrb.mxu2 %v1928_v35  ;;  %958 = vmatmul.bf16.vlgmr.msra.gmra.mxu1 %v288_v47  ;;  %v1965_v35 = vld [vmem:[#allocation2 + $0x2e0] sm:$0xff]  ;;  %v53_v47 = vld [vmem:[%s2198_s0 + $0x28] sm:$0xff] }
  0x28   :  { %1002 = vmatpush.bf16.msrb.mxu1 %v1920_v40  ;;  %984 = vmatmul.bf16.vlgmr.msra.gmra.mxu3 %v290_v46  ;;  %v1939_v40 = vld [vmem:[#allocation2 + $0x210] sm:$0xff]  ;;  %v52_v46 = vld [vmem:[%s2198_s0 + $0x20] sm:$0xff] }
  0x29   :  { %1028 = vmatpush.bf16.msrb.mxu3 %v1936_v41  ;;  %v1955_v41 = vld [vmem:[#allocation2 + $0x290] sm:$0xff] }
  0x2a   :  { %990 = vmatpush.bf16.msrb.mxu0 %v1911_v44  ;;  %v1938_v44 = vld [vmem:[#allocation2 + $0x208] sm:$0xff] }
  0x2b   :  { %1016 = vmatpush.bf16.msrb.mxu2 %v1927_v45  ;;  %v1954_v45 = vld [vmem:[#allocation2 + $0x288] sm:$0xff] }
  0x2c   :  { %1003 = vmatpush.bf16.msrb.mxu1 %v1919_v48  ;;  %v1946_v48 = vld [vmem:[#allocation2 + $0x248] sm:$0xff] }
  0x2d   :  { %1029 = vmatpush.bf16.msrb.mxu3 %v1935_v49  ;;  %v1962_v49 = vld [vmem:[#allocation2 + $0x2c8] sm:$0xff] }
  0x2e   :  { %991 = vmatpush.bf16.msrb.mxu0 %v1910_v50  ;;  %v282_v50 = vunpack.c.l.b16 %v52_v46 }
  0x2f   :  { %1017 = vmatpush.bf16.msrb.mxu2 %v1926_v51  ;;  %v284_v51 = vunpack.c.l.b16 %v53_v47 }
  0x30   :  { %1004 = vmatpush.bf16.msrb.mxu1 %v1918_v52  ;;  %v1937_v52 = vld [vmem:[#allocation2 + $0x200] sm:$0xff] }
  0x31   :  { %1030 = vmatpush.bf16.msrb.mxu3 %v1934_v53  ;;  %v1953_v53 = vld [vmem:[#allocation2 + $0x280] sm:$0xff] }
  0x32   :  { %992 = vmatpush.bf16.msrb.mxu0 %v1909_v54  ;;  %v1976_v54 = vld [vmem:[#allocation2 + $0x338] sm:$0xff] }
  0x33   :  { %1018 = vmatpush.bf16.msrb.mxu2 %v1925_v55  ;;  %v283_v55 = vunpack.c.h.b16 %v52_v46 }
  0x34   :  { %1005 = vmatpush.bf16.msrb.mxu1 %v1917_v56  ;;  %v285_v56 = vunpack.c.h.b16 %v53_v47 }
  0x35   :  { %1031 = vmatpush.bf16.msrb.mxu3 %v1933_v57  ;;  %v1945_v57 = vld [vmem:[#allocation2 + $0x240] sm:$0xff] }
  0x36   :  { %993 = vmatpush.bf16.msrb.mxu0 %v1908_v58  ;;  %v1961_v58 = vld [vmem:[#allocation2 + $0x2c0] sm:$0xff] }
  0x37   :  { %1019 = vmatpush.bf16.msrb.mxu2 %v1924_v59  ;;  %v295_v59 = vpack.c.b16 %v282_v50, %v282_v50 }
  0x38   :  { %1006 = vmatpush.bf16.msrb.mxu1 %v1916_v60  ;;  %v297_v60 = vpack.c.b16 %v284_v51, %v284_v51 }
  0x39   :  { %1032 = vmatpush.bf16.msrb.mxu3 %v1932_v61  ;;  %v296_v61 = vpack.c.b16 %v283_v55, %v283_v55  ;;  %v1988_v55 = vld [vmem:[%s2203_s5 + $0x18] sm:$0xff] }
  0x3a   :  { %994 = vmatpush.bf16.msrb.mxu0 %v1907_v62  ;;  %v298_v62 = vpack.c.b16 %v285_v56, %v285_v56 }
  0x3b   :  { %1020 = vmatpush.bf16.msrb.mxu2 %v1923_v63  ;;  %v1975_v63 = vld [vmem:[#allocation2 + $0x330] sm:$0xff] }
  0x3c   :  { %1007 = vmatpush.bf16.msrb.mxu1 %v1915_v0  ;;  %v1974_v0 = vld [vmem:[#allocation2 + $0x328] sm:$0xff] }
  0x3d   :  { %1033 = vmatpush.bf16.msrb.mxu3 %v1931_v1  ;;  %v1973_v1 = vld [vmem:[#allocation2 + $0x320] sm:$0xff] }
  0x3e   :  { %995 = vmatpush.bf16.msrb.mxu0 %v1906_v2  ;;  %v1972_v2 = vld [vmem:[#allocation2 + $0x318] sm:$0xff] }
  0x3f   :  { %1021 = vmatpush.bf16.msrb.mxu2 %v1922_v3  ;;  %v1971_v3 = vld [vmem:[#allocation2 + $0x310] sm:$0xff] }
  0x40   :  { %1008 = vmatpush.bf16.msrb.mxu1 %v1914_v6  ;;  %v286_v6 = vunpack.c.l.b16 %v54_v5  ;;  %v1998_v5 = vld [vmem:[%s2205_s7 + $0x28] sm:$0xff] }
  0x41   :  { %1034 = vmatpush.bf16.msrb.mxu3 %v1930_v7  ;;  %v1969_v7 = vld [vmem:[#allocation2 + $0x300] sm:$0xff] }
  0x42   :  { %996 = vmatpush.bf16.msrb.mxu0 %v1905_v8  ;;  %v299_v8 = vpack.c.b16 %v286_v6, %v286_v6  ;;  %v1997_v6 = vld [vmem:[%s2205_s7 + $0x20] sm:$0xff] }
  0x43   :  { %1022 = vmatpush.bf16.msrb.mxu2 %v1921_v9 }
  0x44   :  { %1009 = vmatpush.bf16.msrb.mxu1 %v1913_v14 }
  0x45   :  { %1035 = vmatpush.bf16.msrb.mxu3 %v1929_v15  ;;  %997 = vmatmul.bf16.vlgmr.msrb.gmra.mxu0 %v291_v21 }
  0x46   :  { %1041 = vmatpush.bf16.msra.mxu0 %v1944_v12  ;;  %1023 = vmatmul.bf16.vlgmr.msrb.gmra.mxu2 %v293_v20  ;;  %v1983_v20 = vld [vmem:[%s2201_s3 + $0x30] sm:$0xff] }
  0x47   :  { %1067 = vmatpush.bf16.msra.mxu2 %v1960_v13  ;;  %1010 = vmatmul.bf16.vlgmr.msrb.gmra.mxu1 %v292_v25 }
  0x48   :  { %1054 = vmatpush.bf16.msra.mxu1 %v1952_v18  ;;  %1036 = vmatmul.bf16.vlgmr.msrb.gmra.mxu3 %v294_v24 }
  0x49   :  { %1080 = vmatpush.bf16.msra.mxu3 %v1968_v19 }
  0x4a   :  { %1042 = vmatpush.bf16.msra.mxu0 %v1943_v22  ;;  %v1982_v22 = vld [vmem:[%s2201_s3 + $0x28] sm:$0xff] }
  0x4b   :  { %1068 = vmatpush.bf16.msra.mxu2 %v1959_v23 }
  0x4c   :  { %1055 = vmatpush.bf16.msra.mxu1 %v1951_v26  ;;  %v1981_v26 = vld [vmem:[%s2201_s3 + $0x20] sm:$0xff] }
  0x4d   :  { %1081 = vmatpush.bf16.msra.mxu3 %v1967_v27  ;;  %v2004_v27 = vld [vmem:[%s2200_s2] ss:$0 sm:$0xff] }
  0x4e   :  { %1043 = vmatpush.bf16.msra.mxu0 %v1942_v28 }
  0x4f   :  { %1069 = vmatpush.bf16.msra.mxu2 %v1958_v29  ;;  %v1980_v29 = vld [vmem:[%s2201_s3 + $0x18] sm:$0xff] }
  0x50   :  { %1056 = vmatpush.bf16.msra.mxu1 %v1950_v30 }
  0x51   :  { %1082 = vmatpush.bf16.msra.mxu3 %v1966_v31 }
  0x52   :  { %1044 = vmatpush.bf16.msra.mxu0 %v1941_v32  ;;  %v1979_v32 = vld [vmem:[%s2201_s3 + $0x10] sm:$0xff] }
  0x53   :  { %1070 = vmatpush.bf16.msra.mxu2 %v1957_v33 }
  0x54   :  { %1057 = vmatpush.bf16.msra.mxu1 %v1949_v34  ;;  %v1978_v34 = vld [vmem:[%s2201_s3 + $0x8] sm:$0xff] }
  0x55   :  { %1083 = vmatpush.bf16.msra.mxu3 %v1965_v35 }
  0x56   :  { %1045 = vmatpush.bf16.msra.mxu0 %v1940_v36 }
  0x57   :  { %1071 = vmatpush.bf16.msra.mxu2 %v1956_v37  ;;  %v1977_v37 = vld [vmem:[%s2201_s3] sm:$0xff] }
  0x58   :  { %1058 = vmatpush.bf16.msra.mxu1 %v1948_v38 }
  0x59   :  { %1084 = vmatpush.bf16.msra.mxu3 %v1964_v39 }
  0x5a   :  { %1046 = vmatpush.bf16.msra.mxu0 %v1939_v40 }
  0x5b   :  { %1072 = vmatpush.bf16.msra.mxu2 %v1955_v41 }
  0x5c   :  { %1059 = vmatpush.bf16.msra.mxu1 %v1947_v42  ;;  %v1992_v42 = vld [vmem:[%s2203_s5 + $0x38] sm:$0xff] }
  0x5d   :  { %1085 = vmatpush.bf16.msra.mxu3 %v1963_v43 }
  0x5e   :  { %1047 = vmatpush.bf16.msra.mxu0 %v1938_v44 }
  0x5f   :  { %1073 = vmatpush.bf16.msra.mxu2 %v1954_v45  ;;  %v1991_v45 = vld [vmem:[%s2203_s5 + $0x30] sm:$0xff] }
  0x60   :  { %1060 = vmatpush.bf16.msra.mxu1 %v1946_v48  ;;  %v1990_v48 = vld [vmem:[%s2203_s5 + $0x28] sm:$0xff] }
  0x61   :  { %1086 = vmatpush.bf16.msra.mxu3 %v1962_v49 }
  0x62   :  { %1048 = vmatpush.bf16.msra.mxu0 %v1937_v52  ;;  %v1989_v52 = vld [vmem:[%s2203_s5 + $0x20] sm:$0xff] }
  0x63   :  { %1074 = vmatpush.bf16.msra.mxu2 %v1953_v53 }
  0x64   :  { %1061 = vmatpush.bf16.msra.mxu1 %v1945_v57  ;;  %v1987_v57 = vld [vmem:[%s2203_s5 + $0x10] sm:$0xff] }
  0x65   :  { %1087 = vmatpush.bf16.msra.mxu3 %v1961_v58  ;;  %1049 = vmatmul.bf16.vlgmr.msra.gmra.mxu0 %v295_v59 }
  0x66   :  { %1093 = vmatpush.bf16.msrb.mxu0 %v1976_v54  ;;  %1075 = vmatmul.bf16.vlgmr.msra.gmra.mxu2 %v297_v60 }
  0x67   :  { %1062 = vmatmul.bf16.vlgmr.msra.gmra.mxu1 %v296_v61  ;;  %1259 = vmatpush.bf16.msrb.mxu2 %v1992_v42 }
  0x68   :  { %1088 = vmatmul.bf16.vlgmr.msra.gmra.mxu3 %v298_v62  ;;  %1176 = vmatpush.bf16.msrb.mxu1 %v1984_v17  ;;  %v2006_v17 = vld [vmem:[%s2204_s6] ss:$0 sm:$0xff] }
  0x6a   :  { %1094 = vmatpush.bf16.msrb.mxu0 %v1975_v63 }
  0x6b   :  { %1260 = vmatpush.bf16.msrb.mxu2 %v1991_v45 }
  0x6c   :  { %1177 = vmatpush.bf16.msrb.mxu1 %v1983_v20 }
  0x6e   :  { %1095 = vmatpush.bf16.msrb.mxu0 %v1974_v0 }
  0x6f   :  { %1261 = vmatpush.bf16.msrb.mxu2 %v1990_v48 }
  0x70   :  { %1178 = vmatpush.bf16.msrb.mxu1 %v1982_v22 }
  0x72   :  { %1096 = vmatpush.bf16.msrb.mxu0 %v1973_v1  ;;  %v1986_v1 = vld [vmem:[%s2203_s5 + $0x8] sm:$0xff] }
  0x73   :  { %1262 = vmatpush.bf16.msrb.mxu2 %v1989_v52 }
  0x74   :  { %1179 = vmatpush.bf16.msrb.mxu1 %v1981_v26 }
  0x76   :  { %1097 = vmatpush.bf16.msrb.mxu0 %v1972_v2  ;;  %v1985_v2 = vld [vmem:[%s2203_s5] sm:$0xff] }
  0x77   :  { %1263 = vmatpush.bf16.msrb.mxu2 %v1988_v55 }
  0x78   :  { %1180 = vmatpush.bf16.msrb.mxu1 %v1980_v29 }
  0x7a   :  { %1098 = vmatpush.bf16.msrb.mxu0 %v1971_v3  ;;  %v2000_v3 = vld [vmem:[%s2205_s7 + $0x38] sm:$0xff] }
  0x7b   :  { %1264 = vmatpush.bf16.msrb.mxu2 %v1987_v57  ;;  %1342 = vmatpush.bf16.msrb.mxu3 %v2000_v3 }
  0x7c   :  { %1181 = vmatpush.bf16.msrb.mxu1 %v1979_v32 }
  0x7e   :  { %1099 = vmatpush.bf16.msrb.mxu0 %v1970_v4  ;;  %v1999_v4 = vld [vmem:[%s2205_s7 + $0x30] sm:$0xff] }
  0x7f   :  { %1265 = vmatpush.bf16.msrb.mxu2 %v1986_v1  ;;  %1343 = vmatpush.bf16.msrb.mxu3 %v1999_v4 }
  0x80   :  { %1182 = vmatpush.bf16.msrb.mxu1 %v1978_v34 }
  0x82   :  { %1100 = vmatpush.bf16.msrb.mxu0 %v1969_v7  ;;  %v1996_v7 = vld [vmem:[%s2205_s7 + $0x18] sm:$0xff] }
  0x83   :  { %1266 = vmatpush.bf16.msrb.mxu2 %v1985_v2  ;;  %1344 = vmatpush.bf16.msrb.mxu3 %v1998_v5 }
  0x84   :  { %1183 = vmatpush.bf16.msrb.mxu1 %v1977_v37 }
  0x85   :  { %1101 = vmatmul.bf16.vlgmr.msrb.gmra.mxu0 %v299_v8  ;;  %v1995_v8 = vld [vmem:[%s2205_s7 + $0x10] sm:$0xff] }
  0x87   :  { %1345 = vmatpush.bf16.msrb.mxu3 %v1997_v6 }
  0x8b   :  { %1346 = vmatpush.bf16.msrb.mxu3 %v1996_v7 }
  0x8f   :  { %1347 = vmatpush.bf16.msrb.mxu3 %v1995_v8 }
  0xa2   :  { %v946_v9 = vpop.f32.mrf.mxu0 }
  0xa3   :  { %v947_v31 = vadd.f32 %v2004_v27, %v946_v9  ;;  %v2005_v9 = vld [vmem:[%s2202_s4] ss:$0 sm:$0xff] }
  0xa4   :  { %v959_v10 = vpop.f32.mrf.mxu1 }
  0xa5   :  { %v960_v33 = vadd.f32 %v959_v10, %v947_v31 }
  0xa9   :  { %v972_v11 = vpop.f32.mrf.mxu2 }
  0xaa   :  { %v948_v13 = vpop.f32.mrf.mxu0  ;;  %v973_v35 = vadd.f32 %v972_v11, %v960_v33 }
  0xab   :  { %v985_v12 = vpop.f32.mrf.mxu3 }
  0xac   :  { %v961_v14 = vpop.f32.mrf.mxu1  ;;  %v986_v38 = vadd.f32 %v985_v12, %v973_v35 }
  0xb1   :  { %v974_v15 = vpop.f32.mrf.mxu2 }
  0xb2   :  { %v1994_v15 = vld [vmem:[%s2205_s7 + $0x8] sm:$0xff] }
  0xb3   :  { %v987_v16 = vpop.f32.mrf.mxu3  ;;  %1348 = vmatpush.bf16.msrb.mxu3 %v1994_v15 }
  0xb4   :  { %v1993_v16 = vld [vmem:[%s2205_s7] sm:$0xff] }
  0xb7   :  { %1349 = vmatpush.bf16.msrb.mxu3 %v1993_v16 }
  0xc2   :  { %v998_v18 = vpop.f32.mrf.mxu0 }
  0xc3   :  { %v999_v40 = vadd.f32 %v998_v18, %v986_v38 }
  0xc4   :  { %v1011_v19 = vpop.f32.mrf.mxu1 }
  0xc5   :  { %v1012_v46 = vadd.f32 %v1011_v19, %v999_v40 }
  0xc9   :  { %v1024_v21 = vpop.f32.mrf.mxu2 }
  0xca   :  { %v1000_v24 = vpop.f32.mrf.mxu0  ;;  %v1025_v49 = vadd.f32 %v1024_v21, %v1012_v46 }
  0xcb   :  { %v1037_v23 = vpop.f32.mrf.mxu3 }
  0xcc   :  { %v1013_v25 = vpop.f32.mrf.mxu1  ;;  %v1038_v53 = vadd.f32 %v1037_v23, %v1025_v49  ;;  %v2007_v23 = vld [vmem:[%s2206_s8] ss:$0 sm:$0xff] }
  0xd1   :  { %v1026_v28 = vpop.f32.mrf.mxu2 }
  0xd3   :  { %v1039_v30 = vpop.f32.mrf.mxu3 }
  0xe2   :  { %v1050_v36 = vpop.f32.mrf.mxu0 }
  0xe3   :  { %v1051_v54 = vadd.f32 %v1050_v36, %v1038_v53 }
  0xe4   :  { %v1063_v39 = vpop.f32.mrf.mxu1 }
  0xe5   :  { %v1064_v56 = vadd.f32 %v1063_v39, %v1051_v54 }
  0xe9   :  { %v1076_v41 = vpop.f32.mrf.mxu2 }
  0xea   :  { %v1052_v44 = vpop.f32.mrf.mxu0  ;;  %v1077_v58 = vadd.f32 %v1076_v41, %v1064_v56 }
  0xeb   :  { %v1089_v43 = vpop.f32.mrf.mxu3 }
  0xec   :  { %v1065_v47 = vpop.f32.mrf.mxu1  ;;  %v1090_v59 = vadd.f32 %v1089_v43, %v1077_v58 }
  0xf1   :  { %v1078_v50 = vpop.f32.mrf.mxu2 }
  0xf3   :  { %v1091_v51 = vpop.f32.mrf.mxu3 }
 0x102   :  { %v1102_v60 = vpop.f32.mrf.mxu0 }
 0x103   :  { %v1103_v61 = vadd.f32 %v1102_v60, %v1090_v59 }
 0x105   :  { %v1106_v62 = vmax.f32 %v1103_v61, 0.0 }
 0x107   :  { %v1107_v63 = vpack.c.bf16 %v1106_v62, %v1106_v62 }
 0x109   :  { %1184 = vmatmul.bf16.vlgmr.msrb.gmra.mxu1 %v1107_v63 }
 0x10a   :  { %v1104_v0 = vpop.f32.mrf.mxu0 }
 0x186   :  { %v1185_v10 = vpop.f32.mrf.mxu1 }
 0x187   :  { %v1186_v11 = vadd.f32 %v2005_v9, %v1185_v10 }
 0x189   :  { %v1189_v12 = vmax.f32 %v1186_v11, 0.0 }
 0x18b   :  { %v1190_v13 = vpack.c.bf16 %v1189_v12, %v1189_v12 }
 0x18d   :  { %1267 = vmatmul.bf16.vlgmr.msrb.gmra.mxu2 %v1190_v13 }
 0x18e   :  { %v1187_v14 = vpop.f32.mrf.mxu1 }
 0x210   :  { %v1268_v18 = vpop.f32.mrf.mxu2 }
 0x211   :  { %v1269_v19 = vadd.f32 %v2006_v17, %v1268_v18 }
 0x213   :  { %v1272_v20 = vmax.f32 %v1269_v19, 0.0 }
 0x215   :  { %v1273_v21 = vpack.c.bf16 %v1272_v20, %v1272_v20 }
 0x217   :  { %1350 = vmatmul.bf16.vlgmr.msrb.gmra.mxu3 %v1273_v21 }
 0x218   :  { %v1270_v22 = vpop.f32.mrf.mxu2 }
 0x29a   :  { %v1351_v24 = vpop.f32.mrf.mxu3 }
 0x29b   :  { %v1352_v25 = vadd.f32 %v2007_v23, %v1351_v24 }
 0x29d   :  { %1355 = vst [vmem:[%s2207_s9] sm:$0xff] %v1352_v25 }
 0x2a2   :  { %v1353_v26 = vpop.f32.mrf.mxu3 }
 0x2a3   :  { %1360 = vsyncpa [#allocation3], 1 }

</bundles_post_ra>
